<compile_context>
chip_gen: v6e
topology: v6e:2x2x1
jax: 0.10.0
libtpu: 0.0.40
codegen_flags: <defaults>
</compile_context>

<pallas_src>
import functools

import jax
import jax.numpy as jnp
import numpy as np
from jax.experimental import pallas as pl
from jax.experimental.pallas import tpu as pltpu


def _contrastive_loss_kernel(x1_ref, x2_ref, label_ref, out_ref, acc_ref, *,
                             margin, eps, n_total, tile_n, blocks_per_core,
                             need_mask):
    c = pl.program_id(0)          # core-split axis ("parallel")
    i = pl.program_id(1)          # streaming/reduction axis ("arbitrary")

    # Zero the per-core VMEM accumulator at the start of each core's sweep.
    @pl.when(i == 0)
    def _():
        acc_ref[...] = jnp.zeros_like(acc_ref)

    x1 = x1_ref[...].astype(jnp.float32)          # (tile_n, D)
    x2 = x2_ref[...].astype(jnp.float32)          # (tile_n, D)
    label = label_ref[...].astype(jnp.float32)    # (tile_n, 1)

    diff = x1 - x2 + eps                          # PyTorch pairwise_distance adds eps to diff
    sq_dist = jnp.sum(diff * diff, axis=-1, keepdims=True)   # (tile_n, 1)
    dist = jnp.sqrt(sq_dist)                      # euclidean distance (EUP)
    hinge = jnp.maximum(margin - dist, 0.0)       # clamp(margin - d, min=0)

    # Use sq_dist directly for the non-hinge branch (no dependency on sqrt).
    per_sample = (1.0 - label) * sq_dist + label * (hinge * hinge)

    if need_mask:
        # Logical (un-clamped) block index of this step.
        blk = c * blocks_per_core + i
        is_edge = (blk + 1) * tile_n > n_total    # ragged tail or overrun block

        @pl.when(jnp.logical_not(is_edge))
        def _():
            acc_ref[...] += per_sample            # steady state: no mask cost

        @pl.when(is_edge)
        def _():
            rows = jax.lax.broadcasted_iota(jnp.int32, (tile_n, 1), 0)
            valid = rows < (n_total - blk * tile_n)
            # Select-style masking: safe even if OOB rows produced inf/NaN.
            acc_ref[...] += jnp.where(valid, per_sample, 0.0)
    else:
        acc_ref[...] += per_sample

    # Finalize this core's partial sum once, into a lane-dense output block.
    @pl.when(i == blocks_per_core - 1)
    def _():
        total = jnp.sum(acc_ref[...], axis=0, keepdims=True)      # (1, 1)
        out_ref[...] = jnp.broadcast_to(total.reshape(1, 1, 1), out_ref.shape)


def _choose_tile_n(n, d, itemsize, sublane):
    """Byte-budget tile sizing (rows per grid step)."""
    lane = 128
    d_pad = ((d + lane - 1) // lane) * lane        # VMEM lane padding of the feature dim
    # (a) HBM streaming: target ~4 MiB of input traffic per step (2 tensors)
    #     so the ~0.35 us fixed per-step cost stays small vs DMA time.
    t_hbm = (4 * 1024 * 1024) // max(1, 2 * d * itemsize)
    # (b) VMEM: 2 inputs x 2 pipeline buffers + label tiles (lane-padded) +
    #     accumulator + headroom for f32 intermediates, within a ~24 MiB
    #     working budget (vmem_limit_bytes is set to 32 MiB, OK on v5e/v6e/v7x).
    per_row = (2 * 2 * d_pad * itemsize    # x1, x2, double-buffered
               + 2 * lane * 4              # label tile, double-buffered (lane-padded)
               + lane * 4                  # accumulator row
               + 3 * d_pad * 4)            # f32 intermediates headroom
    t_vmem = (24 * 1024 * 1024) // per_row
    # (c) cap the per-step padded vector footprint (~2 MiB f32) to keep the
    #     fully-unrolled Mosaic body / vreg pressure reasonable.
    t_unroll = (2 * 1024 * 1024) // (d_pad * 4)
    t = min(t_hbm, t_vmem, t_unroll, n)
    if n < sublane:
        return max(1, n)
    return int(max(sublane, (t // sublane) * sublane))


def contrastive_loss(output1, output2, label, margin=2.0, tile_n=None):
    """Pallas TPU implementation of ContrastiveLoss.forward."""
    assert output1.shape == output2.shape and output1.ndim == 2
    n, d = output1.shape
    itemsize = jnp.dtype(output1.dtype).itemsize
    sublane = max(8, 32 // itemsize)               # 8/f32, 16/bf16, 32/int8

    label2d = jnp.reshape(label, (n, 1)).astype(jnp.float32)

    if tile_n is None:
        tile_n = _choose_tile_n(n, d, itemsize, sublane)
    tile_n = int(min(tile_n, n))

    num_blocks = pl.cdiv(n, tile_n)
    num_core_splits = 2 if num_blocks > 1 else 1   # use both v7x TCs when useful
    blocks_per_core = pl.cdiv(num_blocks, num_core_splits)
    covered = num_core_splits * blocks_per_core * tile_n
    need_mask = covered != n

    max_blk = num_blocks - 1
    if num_core_splits * blocks_per_core > num_blocks:
        # Last core may have one overrun step; clamp its block index (the
        # duplicated data is fully masked out in the kernel).
        def in_map(c, i):
            return (jnp.minimum(c * blocks_per_core + i, max_blk), 0)
    else:
        def in_map(c, i):
            return (c * blocks_per_core + i, 0)

    kernel = functools.partial(
        _contrastive_loss_kernel,
        margin=float(margin), eps=1e-6, n_total=n, tile_n=tile_n,
        blocks_per_core=blocks_per_core, need_mask=need_mask,
    )

    grid_spec = pltpu.PrefetchScalarGridSpec(
        num_scalar_prefetch=0,
        grid=(num_core_splits, blocks_per_core),
        in_specs=[
            pl.BlockSpec((tile_n, d), in_map),     # output1 tile
            pl.BlockSpec((tile_n, d), in_map),     # output2 tile
            pl.BlockSpec((tile_n, 1), in_map),     # label column tile
        ],
        # One lane-dense (1,8,128) partial-sum block per core split.
        out_specs=pl.BlockSpec((1, 8, 128), lambda c, i: (c, 0, 0)),
        scratch_shapes=[pltpu.VMEM((tile_n, 1), jnp.float32)],   # running per-row sums
    )

    cost = pl.CostEstimate(
        flops=n * (4 * d + 10),
        transcendentals=n,                        # one sqrt per row
        bytes_accessed=2 * n * d * itemsize + n * 4 + num_core_splits * 8 * 128 * 4,
    )

    partials = pl.pallas_call(
        kernel,
        grid_spec=grid_spec,
        out_shape=jax.ShapeDtypeStruct((num_core_splits, 8, 128), jnp.float32),
        compiler_params=pltpu.CompilerParams(
            dimension_semantics=("parallel", "arbitrary"),
            vmem_limit_bytes=32 * 1024 * 1024,
        ),
        cost_estimate=cost,
    )(output1, output2, label2d)

    # Combine per-core partial sums and take the batch mean.
    return jnp.sum(partials[:, 0, 0]) / jnp.float32(n)


def _reference(output1, output2, label, margin=2.0, eps=1e-6):
    # Pure-JAX reference mirroring the PyTorch forward for validation.
    diff = output1.astype(jnp.float32) - output2.astype(jnp.float32) + eps
    dist = jnp.sqrt(jnp.sum(diff * diff, axis=-1))
    hinge = jnp.maximum(margin - dist, 0.0)
    lab = label.astype(jnp.float32)
    return jnp.mean((1.0 - lab) * dist**2 + lab * hinge**2)


if __name__ == "__main__":
    # 1) Small batch of embedding pairs (single block, no masking path).
    key = jax.random.PRNGKey(0)
    k1, k2, k3 = jax.random.split(key, 3)
    N, D = 8, 32
    o1 = jax.random.normal(k1, (N, D), dtype=jnp.float32)
    o2 = jax.random.normal(k2, (N, D), dtype=jnp.float32)
    lab = jax.random.bernoulli(k3, 0.5, (N,)).astype(jnp.float32)
    loss = jax.block_until_ready(contrastive_loss(o1, o2, lab, margin=2.0))
    ref = _reference(o1, o2, lab, margin=2.0)
    assert np.allclose(np.asarray(loss), np.asarray(ref), rtol=1e-5, atol=1e-5), (loss, ref)

    # 2) Multi-tile ragged batch with an explicit small tile: exercises the
    #    2-way core split, block-index clamping, and edge-tile masking.
    N2, D2 = 130, 32
    k4, k5, k6 = jax.random.split(jax.random.PRNGKey(1), 3)
    o1b = jax.random.normal(k4, (N2, D2), dtype=jnp.float32)
    o2b = jax.random.normal(k5, (N2, D2), dtype=jnp.float32)
    lab2 = jax.random.bernoulli(k6, 0.5, (N2,)).astype(jnp.float32)
    loss2 = jax.block_until_ready(contrastive_loss(o1b, o2b, lab2, margin=2.0, tile_n=64))
    ref2 = _reference(o1b, o2b, lab2, margin=2.0)
    assert np.allclose(np.asarray(loss2), np.asarray(ref2), rtol=1e-4, atol=1e-5), (loss2, ref2)

    # 3) Auto byte-budget tile sizing with a ragged tail.
    N3, D3 = 1003, 40
    k7, k8, k9 = jax.random.split(jax.random.PRNGKey(2), 3)
    o1c = jax.random.normal(k7, (N3, D3), dtype=jnp.float32)
    o2c = jax.random.normal(k8, (N3, D3), dtype=jnp.float32)
    lab3 = jax.random.bernoulli(k9, 0.5, (N3,)).astype(jnp.float32)
    loss3 = jax.block_until_ready(contrastive_loss(o1c, o2c, lab3, margin=2.0))
    ref3 = _reference(o1c, o2c, lab3, margin=2.0)
    assert np.allclose(np.asarray(loss3), np.asarray(ref3), rtol=1e-4, atol=1e-5), (loss3, ref3)

    print("KERNEL_OK")
</pallas_src>

<mosaic_0001>
module attributes {stable_mosaic.version = 11 : i64} {
  func.func @_contrastive_loss_kernel(%arg0: i32, %arg1: i32, %arg2: memref<8x32xf32, #tpu.memory_space<vmem>>, %arg3: memref<8x32xf32, #tpu.memory_space<vmem>>, %arg4: memref<8x1xf32, #tpu.memory_space<vmem>>, %arg5: memref<1x8x128xf32, #tpu.memory_space<vmem>>, %arg6: memref<8x1xf32, #tpu.memory_space<vmem>>) attributes {dimension_semantics = [#tpu.dimension_semantics<parallel>, #tpu.dimension_semantics<arbitrary>], iteration_bounds = array<i64: 1, 1>, scalar_prefetch = 0 : i64, scratch_operands = 1 : i64, tpu.core_type = #tpu.core_type<tc>, window_params = [{transform_indices = @transform_0, window_bounds = array<i64: 8, 32>}, {transform_indices = @transform_1, window_bounds = array<i64: 8, 32>}, {transform_indices = @transform_2, window_bounds = array<i64: 8, 1>}, {transform_indices = @transform_3, window_bounds = array<i64: 1, 8, 128>}]} {
    %c0_i32 = arith.constant 0 : i32
    %0 = arith.cmpi eq, %arg1, %c0_i32 : i32
    %1 = arith.extui %0 : i1 to i32
    %c0_i32_0 = arith.constant 0 : i32
    %2 = arith.cmpi ne, %1, %c0_i32_0 : i32
    scf.if %2 {
      %cst_16 = arith.constant 0.000000e+00 : f32
      %29 = vector.broadcast %cst_16 : f32 to vector<8x1xf32>
      %c0_17 = arith.constant 0 : index
      %c0_18 = arith.constant 0 : index
      %30 = vector.load %arg6[%c0_17, %c0_18] : memref<8x1xf32, #tpu.memory_space<vmem>>, vector<8x1xf32>
      tpu.vector_store %arg6[%c0_17, %c0_18], %29 {strides = array<i32>} : memref<8x1xf32, #tpu.memory_space<vmem>>, vector<8x1xf32>,
    } else {
    }
    %c0 = arith.constant 0 : index
    %c0_1 = arith.constant 0 : index
    %3 = vector.load %arg2[%c0, %c0_1] : memref<8x32xf32, #tpu.memory_space<vmem>>, vector<8x32xf32>
    %c0_2 = arith.constant 0 : index
    %c0_3 = arith.constant 0 : index
    %4 = vector.load %arg3[%c0_2, %c0_3] : memref<8x32xf32, #tpu.memory_space<vmem>>, vector<8x32xf32>
    %c0_4 = arith.constant 0 : index
    %c0_5 = arith.constant 0 : index
    %5 = vector.load %arg4[%c0_4, %c0_5] : memref<8x1xf32, #tpu.memory_space<vmem>>, vector<8x1xf32>
    %6 = arith.subf %3, %4 : vector<8x32xf32>
    %cst = arith.constant 9.99999997E-7 : f32
    %7 = vector.broadcast %cst : f32 to vector<8x32xf32>
    %8 = arith.addf %6, %7 : vector<8x32xf32>
    %9 = arith.mulf %8, %8 : vector<8x32xf32>
    %cst_6 = arith.constant dense<0.000000e+00> : vector<8xf32>
    %10 = vector.multi_reduction <add>, %9, %cst_6 [1] : vector<8x32xf32> to vector<8xf32>
    %11 = vector.shape_cast %10 : vector<8xf32> to vector<8x1xf32>
    %12 = math.sqrt %11 : vector<8x1xf32>
    %cst_7 = arith.constant 2.000000e+00 : f32
    %13 = vector.broadcast %cst_7 : f32 to vector<8x1xf32>
    %14 = arith.subf %13, %12 : vector<8x1xf32>
    %cst_8 = arith.constant 0.000000e+00 : f32
    %15 = vector.broadcast %cst_8 : f32 to vector<8x1xf32>
    %16 = arith.maximumf %14, %15 : vector<8x1xf32>
    %cst_9 = arith.constant 1.000000e+00 : f32
    %17 = vector.broadcast %cst_9 : f32 to vector<8x1xf32>
    %18 = arith.subf %17, %5 : vector<8x1xf32>
    %19 = arith.mulf %18, %11 : vector<8x1xf32>
    %20 = arith.mulf %16, %16 : vector<8x1xf32>
    %21 = arith.mulf %5, %20 : vector<8x1xf32>
    %22 = arith.addf %19, %21 : vector<8x1xf32>
    %c0_10 = arith.constant 0 : index
    %c0_11 = arith.constant 0 : index
    %23 = vector.load %arg6[%c0_10, %c0_11] : memref<8x1xf32, #tpu.memory_space<vmem>>, vector<8x1xf32>
    %24 = arith.addf %23, %22 : vector<8x1xf32>
    %c0_12 = arith.constant 0 : index
    %c0_13 = arith.constant 0 : index
    %25 = vector.load %arg6[%c0_12, %c0_13] : memref<8x1xf32, #tpu.memory_space<vmem>>, vector<8x1xf32>
    tpu.vector_store %arg6[%c0_12, %c0_13], %24 {strides = array<i32>} : memref<8x1xf32, #tpu.memory_space<vmem>>, vector<8x1xf32>,
    %c0_i32_14 = arith.constant 0 : i32
    %26 = arith.cmpi eq, %arg1, %c0_i32_14 : i32
    %27 = arith.extui %26 : i1 to i32
    %c0_i32_15 = arith.constant 0 : i32
    %28 = arith.cmpi ne, %27, %c0_i32_15 : i32
    scf.if %28 {
      %c0_16 = arith.constant 0 : index
      %c0_17 = arith.constant 0 : index
      %29 = vector.load %arg6[%c0_16, %c0_17] : memref<8x1xf32, #tpu.memory_space<vmem>>, vector<8x1xf32>
      %cst_18 = arith.constant dense<0.000000e+00> : vector<1xf32>
      %30 = vector.multi_reduction <add>, %29, %cst_18 [0] : vector<8x1xf32> to vector<1xf32>
      %31 = vector.shape_cast %30 : vector<1xf32> to vector<1x1xf32>
      %32 = vector.shape_cast %31 : vector<1x1xf32> to vector<1x1x1xf32>
      %33 = vector.shape_cast %32 : vector<1x1x1xf32> to vector<1x1x1xf32>
      %34 = vector.broadcast %33 : vector<1x1x1xf32> to vector<1x8x128xf32>
      %c0_19 = arith.constant 0 : index
      %c0_20 = arith.constant 0 : index
      %c0_21 = arith.constant 0 : index
      %35 = vector.load %arg5[%c0_19, %c0_20, %c0_21] : memref<1x8x128xf32, #tpu.memory_space<vmem>>, vector<1x8x128xf32>
      tpu.vector_store %arg5[%c0_19, %c0_20, %c0_21], %34 {strides = array<i32>} : memref<1x8x128xf32, #tpu.memory_space<vmem>>, vector<1x8x128xf32>,
    } else {
    }
    return
  }
  func.func @transform_0(%arg0: i32, %arg1: i32) -> (i32, i32) {
    %c1_i32 = arith.constant 1 : i32
    %0 = arith.muli %arg0, %c1_i32 : i32
    %1 = arith.addi %0, %arg1 : i32
    %c0_i32 = arith.constant 0 : i32
    %c0_i32_0 = arith.constant 0 : i32
    return %1, %c0_i32 : i32, i32
  }
  func.func @transform_1(%arg0: i32, %arg1: i32) -> (i32, i32) {
    %c1_i32 = arith.constant 1 : i32
    %0 = arith.muli %arg0, %c1_i32 : i32
    %1 = arith.addi %0, %arg1 : i32
    %c0_i32 = arith.constant 0 : i32
    %c0_i32_0 = arith.constant 0 : i32
    return %1, %c0_i32 : i32, i32
  }
  func.func @transform_2(%arg0: i32, %arg1: i32) -> (i32, i32) {
    %c1_i32 = arith.constant 1 : i32
    %0 = arith.muli %arg0, %c1_i32 : i32
    %1 = arith.addi %0, %arg1 : i32
    %c0_i32 = arith.constant 0 : i32
    %c0_i32_0 = arith.constant 0 : i32
    return %1, %c0_i32 : i32, i32
  }
  func.func @transform_3(%arg0: i32, %arg1: i32) -> (i32, i32, i32) {
    %c0_i32 = arith.constant 0 : i32
    %c0_i32_0 = arith.constant 0 : i32
    %c0_i32_1 = arith.constant 0 : i32
    return %arg0, %c0_i32, %c0_i32_0 : i32, i32, i32
  }
}

</mosaic_0001>

<bundles_post_ra>
// kernel: tpu_custom_call.1
= control target key start
LH: loop header
LB: loop body
LE: loop exit
PB: predicated region body
PF: predicated region fallthrough
CT: control target
= control target key end

     0   :  { %8 = vsyncpa [#allocation4], 0  ;;  %s233_s0 = inlined_call_operand.vmem [shape: f32[8,32], index: 0, kind: input, shape index: {}]   ;;  %s234_s1 = inlined_call_operand.hbm [shape: f32[8,32], index: 1, kind: input, shape index: {}]   ;;  %s235_s2 = inlined_call_operand.vmem [shape: f32[8,1], index: 2, kind: input, shape index: {}]   ;;  %s236_s3 = inlined_call_operand.hbm [shape: f32[1,8,128], index: 3, kind: output, shape index: {}]  }
   0x1   :  { %9 = vsyncpa [#allocation5], 0  ;;  %s194_s12 = smov [#allocation3]  }
   0x2   :  { %s27_s13 = sshll.u32 %s194_s12, 4  ;;  %s28_s13 = int_to_ptr.vmem [resolvable:$true] %s27_s13 }
   0x3   :  { %s158_s14 = scalar_lea.vmem %s28_s13, 128  ;;  %p163_p1 = scmp.lt.s32.totalorder %s28_s13, %s28_s13 }
   0x4   :  { %p159_p0 = scmp.ne.s32.totalorder %s28_s13, %s158_s14  ;;  %p164_p2 = scmp.lt.s32.totalorder %s158_s14, %s158_s14 }
   0x6   :  { %p165_p3 = por %p164_p2, %p163_p1 }
   0x8   :  { %p166_p4 = pnand %p165_p3, %p159_p0 }
   0xa   :  { %169 = shalt.err (!%p166_p4)
}
   0xb   :  { %30 = dma.hbm_to_vmem [thread:$0]  %s234_s1, 128, %s28_s13, [#allocation4]  }
   0xc   :  { %190 = dma.done.wait [#allocation4], 128  }
   0xd   :  { %191 = vsyncadd [#allocation4], 4294967168  ;;  %v71_v0 = vld [vmem:[%s233_s0] sm:$0xff]  ;;  %v72_v1 = vld [vmem:[#allocation3] sm:$0xff]  ;;  %vm77_vm0 = vcmask 261120   ;;  %vm69_vm1 = vcmask 7168  }
   0xe   :  { %v74_v2 = vsub.f32 %v71_v0, %v72_v1  ;;  %v195_v6 = vmov 0.0   ;;  %v196_v7 = vmov 0   ;;  %v73_v13 = vld [vmem:[%s235_s2] sm:$0xff]  ;;  %s197_s2 = smov [#allocation6]  }
   0xf   :  { %70 = vst.msk [vmem:[#allocation2] sm:$0xff] %vm69_vm1, %v195_v6  ;;  %147 = vset.pattern.permute.xlu0 %v196_v7  ;;  %v90_v16 = vsub.f32 1.0, %v73_v13  ;;  %s122_s19 = sshll.u32 %s197_s2, 4  ;;  %s123_s19 = int_to_ptr.vmem [resolvable:$true] %s122_s19 }
  0x10   :  { %v75_v3 = vadd.f32 1e-06, %v74_v2  ;;  %s170_s20 = scalar_lea.vmem %s123_s19, 128  ;;  %p175_p6 = scmp.lt.s32.totalorder %s123_s19, %s123_s19 }
  0x11   :  { %p171_p5 = scmp.ne.s32.totalorder %s123_s19, %s170_s20  ;;  %p176_p7 = scmp.lt.s32.totalorder %s170_s20, %s170_s20 }
  0x12   :  { %v76_v4 = vmul.f32 %v75_v3, %v75_v3 }
  0x13   :  { %p177_p8 = por %p176_p7, %p175_p6 }
  0x14   :  { %v78_v5 = vsel %vm77_vm0, %v76_v4, 0.0 }
  0x15   :  { %79 = vadd.xlane.f32.xlu0 %v78_v5  ;;  %p178_p9 = pnand %p177_p8, %p171_p5 }
  0x16   :  { %v95_v21 = vld [vmem:[#allocation2] sm:$0xff] }
  0x9e   :  { %v80_v8 = vpop.xlane.xlu0 %79 }
  0x9f   :  { %148 = vrsqrt.f32 %v80_v8  ;;  %vm83_vm2 = vcmp.eq.f32.partialorder %v80_v8, inf  ;;  %v86_v11 = vand.u32 2147483648, %v80_v8  ;;  %vm85_vm3 = vcmp.eq.f32.partialorder %v80_v8, 0.0 }
  0xa0   :  { %v91_v19 = vmul.f32 %v90_v16, %v80_v8 }
  0xac   :  { %v149_v9 = vpop.eup %148 }
  0xad   :  { %v82_v10 = vmul.f32 %v149_v9, %v80_v8 }
  0xaf   :  { %v84_v12 = vsel %vm83_vm2, %v80_v8, %v82_v10 }
  0xb0   :  { %v87_v14 = vsel %vm85_vm3, %v86_v11, %v84_v12 }
  0xb1   :  { %v88_v15 = vsub.f32 2.0, %v87_v14 }
  0xb3   :  { %v89_v17 = vmax.f32 %v88_v15, 0.0 }
  0xb5   :  { %v92_v18 = vmul.f32 %v89_v17, %v89_v17 }
  0xb7   :  { %v93_v20 = vmul.f32 %v92_v18, %v73_v13 }
  0xb9   :  { %v94_v22 = vadd.f32 %v93_v20, %v91_v19 }
  0xbb   :  { %v96_v23 = vadd.f32 %v95_v21, %v94_v22 }
  0xbd   :  { %98 = vst.msk [vmem:[#allocation2] sm:$0xff] %vm69_vm1, %v96_v23 }
  0xc4   :  { %v102_v24 = vld [vmem:[#allocation2] sm:$0xff] }
  0xc5   :  { %v103_v25 = vsel %vm69_vm1, %v102_v24, 0.0 }
  0xc6   :  { %v104_v26 = vrot.slane %v103_v25, 4 }
  0xc8   :  { %v105_v27 = vadd.f32 %v104_v26, %v103_v25 }
  0xca   :  { %v106_v28 = vrot.slane %v105_v27, 2 }
  0xcc   :  { %v107_v29 = vadd.f32 %v106_v28, %v105_v27 }
  0xce   :  { %v108_v30 = vrot.slane %v107_v29, 1 }
  0xd0   :  { %v109_v31 = vadd.f32 %v108_v30, %v107_v29 }
  0xd2   :  { %112 = vperm.xlu0 %147, %v109_v31  }
 0x14d   :  { %v113_v32 = vpop.permute.xlu0 %112 }
 0x14e   :  { %115 = vst [vmem:[#allocation6] sm:$0xff] %v113_v32 }
 0x14f   :  { %181 = shalt.err (!%p178_p9)
}
 0x150   :  { %125 = dma.vmem_to_hbm [thread:$0]  %s123_s19, 128, %s236_s3, [#allocation5]  }
 0x151   :  { %192 = dma.done.wait [#allocation5], 128  }
 0x152   :  { %193 = vsyncadd [#allocation5], 4294967168 }
 0x153   :  { %129 = vsyncpa [#allocation4], 1 }
 0x154   :  { %130 = vsyncpa [#allocation5], 1 }

</bundles_post_ra>
